<compile_context>
chip_gen: v5e
topology: v5e:2x2
jax: 0.10.0
libtpu: 0.0.40
codegen_flags: <defaults>
</compile_context>

<pallas_src>
import math

import jax
import jax.numpy as jnp
from jax.experimental import pallas as pl
from jax.experimental.pallas import tpu as pltpu

_LANE = 128
_SUBLANE = 8
# Per-tile VMEM budget for one input block. Peak VMEM is roughly
# 2 (double-buffered input) + 2 (double-buffered output) tiles, i.e. ~16 MiB,
# which is comfortably inside v7x's 64 MiB physical VMEM.
_TILE_BYTES = 4 * 1024 * 1024
_VMEM_LIMIT_BYTES = 48 * 1024 * 1024  # explicit; below v7x's 64 MiB physical


def _expand_kernel(x_ref, o_ref):
    # One grid step = (row-tile r, MC replica m): copy the row tile into
    # out[m, r-th row block]. MC is the INNER grid axis and the input
    # index_map only depends on r, so the input tile is fetched once per row
    # tile and reused for all num_MC writes.
    o_ref[...] = x_ref[...]


def _lane_dense_2d(shape):
    """Choose a 2-D (rows, cols) view of the flattened array whose last dim is
    a large multiple of 128 (lane-dense) when possible; otherwise fall back to
    the natural (prod(leading), last) split."""
    n = math.prod(shape) if shape else 1
    for w in (2048, 1024, 512, 256, 128):
        if n % w == 0 and n >= w:
            return n // w, w
    if len(shape) >= 2:
        return math.prod(shape[:-1]), shape[-1]
    return 1, n


def _row_tile(rows, cols, itemsize):
    """Rows per tile: full extent if it fits the budget, else a multiple of 8
    sized so one tile stays within ~_TILE_BYTES of VMEM."""
    max_rows = max(1, _TILE_BYTES // max(1, cols * itemsize))
    if rows <= max_rows:
        return rows  # full second-to-last extent is always a legal block dim
    return max(_SUBLANE, (max_rows // _SUBLANE) * _SUBLANE)


def mc_expand(x: jax.Array, num_MC: int) -> jax.Array:
    """out[m, ...] = x[...] for m in range(num_MC), via a tiled Pallas copy."""
    orig_shape = x.shape
    rows, cols = _lane_dense_2d(orig_shape)
    x2 = x.reshape(rows, cols)  # layout plumbing only (row-major preserving)

    itemsize = jnp.dtype(x.dtype).itemsize
    tr = _row_tile(rows, cols, itemsize)
    grid_rows = pl.cdiv(rows, tr)

    # Input tile index depends only on the row-tile index -> read once per
    # row tile across the inner MC loop.
    in_spec = pl.BlockSpec((tr, cols), lambda r, m: (r, 0))
    # Output: MC axis squeezed out of the kernel view; block index = (m, r).
    out_spec = pl.BlockSpec((pl.Squeezed(), tr, cols), lambda r, m: (m, r, 0))

    out2 = pl.pallas_call(
        _expand_kernel,
        out_shape=jax.ShapeDtypeStruct((num_MC, rows, cols), x.dtype),
        grid_spec=pltpu.PrefetchScalarGridSpec(
            num_scalar_prefetch=0,
            grid=(grid_rows, num_MC),  # row tiles OUTER, MC INNER
            in_specs=[in_spec],
            out_specs=out_spec,
        ),
        compiler_params=pltpu.CompilerParams(
            dimension_semantics=("parallel", "parallel"),
            vmem_limit_bytes=_VMEM_LIMIT_BYTES,
        ),
    )(x2)

    return out2.reshape((num_MC,) + orig_shape)


class MCExpansionLayer:
    """JAX/Pallas port of MC_ExpansionLayer (no learnable parameters)."""

    def __init__(self, num_MC: int = 1, input_dim: int = 2):
        self.num_MC = num_MC
        self.input_dim = input_dim

    def __call__(self, x: jax.Array) -> jax.Array:
        if x.ndim == self.input_dim:
            return mc_expand(x, self.num_MC)
        elif x.ndim == self.input_dim + 1:
            return x
        else:
            raise ValueError(
                f"Input.dim()={x.ndim}, but should be either "
                f"{self.input_dim} and expanded or {self.input_dim + 1}"
            )


if __name__ == "__main__":
    key = jax.random.PRNGKey(0)
    num_MC = 4
    input_dim = 2

    # Case 1: small (8, 32) input -> lane-densified to a (1, 256) slab.
    B, D = 8, 32
    x = jax.random.normal(key, (B, D), dtype=jnp.float32)
    layer = MCExpansionLayer(num_MC=num_MC, input_dim=input_dim)

    out = jax.block_until_ready(layer(x))
    assert out.shape == (num_MC, B, D), out.shape
    ref = jnp.broadcast_to(x[None], (num_MC, B, D))
    assert jnp.array_equal(out, ref)

    # Case 2: x.ndim == input_dim + 1 -> identity pass-through.
    out2 = jax.block_until_ready(layer(out))
    assert out2.shape == out.shape
    assert jnp.array_equal(out2, out)

    # Case 3: a slightly larger input exercising the lane-dense 2048-wide path.
    k2 = jax.random.PRNGKey(1)
    y = jax.random.normal(k2, (64, 128), dtype=jnp.float32)
    layer3 = MCExpansionLayer(num_MC=3, input_dim=2)
    out3 = jax.block_until_ready(layer3(y))
    assert out3.shape == (3, 64, 128)
    assert jnp.array_equal(out3, jnp.broadcast_to(y[None], (3, 64, 128)))

    print("KERNEL_OK")
</pallas_src>

<mosaic_0001>
module attributes {stable_mosaic.version = 11 : i64} {
  func.func @_expand_kernel(%arg0: i32, %arg1: i32, %arg2: memref<1x256xf32, #tpu.memory_space<vmem>>, %arg3: memref<1x1x256xf32, #tpu.memory_space<vmem>>) attributes {dimension_semantics = [#tpu.dimension_semantics<parallel>, #tpu.dimension_semantics<parallel>], iteration_bounds = array<i64: 1, 4>, scalar_prefetch = 0 : i64, scratch_operands = 0 : i64, tpu.core_type = #tpu.core_type<tc>, window_params = [{transform_indices = @transform_0, window_bounds = array<i64: 1, 256>}, {transform_indices = @transform_1, window_bounds = array<i64: 1, 1, 256>}]} {
    %c0 = arith.constant 0 : index
    %c0_0 = arith.constant 0 : index
    %0 = vector.load %arg2[%c0, %c0_0] : memref<1x256xf32, #tpu.memory_space<vmem>>, vector<1x256xf32>
    %c0_1 = arith.constant 0 : index
    %c0_2 = arith.constant 0 : index
    %c0_3 = arith.constant 0 : index
    %1 = vector.load %arg3[%c0_1, %c0_2, %c0_3] : memref<1x1x256xf32, #tpu.memory_space<vmem>>, vector<1x1x256xf32>
    %2 = vector.shape_cast %1 : vector<1x1x256xf32> to vector<1x256xf32>
    %3 = vector.shape_cast %0 : vector<1x256xf32> to vector<1x1x256xf32>
    tpu.vector_store %arg3[%c0_1, %c0_2, %c0_3], %3 {strides = array<i32>} : memref<1x1x256xf32, #tpu.memory_space<vmem>>, vector<1x1x256xf32>,
    return
  }
  func.func @transform_0(%arg0: i32, %arg1: i32) -> (i32, i32) {
    %c0_i32 = arith.constant 0 : i32
    %c0_i32_0 = arith.constant 0 : i32
    return %arg0, %c0_i32 : i32, i32
  }
  func.func @transform_1(%arg0: i32, %arg1: i32) -> (i32, i32, i32) {
    %c0_i32 = arith.constant 0 : i32
    %c0_i32_0 = arith.constant 0 : i32
    return %arg1, %arg0, %c0_i32 : i32, i32, i32
  }
}

</mosaic_0001>

<bundles_post_ra>
// kernel: tpu_custom_call.1
= control target key start
LH: loop header
LB: loop body
LE: loop exit
PB: predicated region body
PF: predicated region fallthrough
CT: control target
= control target key end

     0   :  { %6 = vsyncpa [#allocation3], 0  ;;  %s523_s0 = inlined_call_operand.hbm [shape: f32[1,256], index: 0, kind: input, shape index: {}]   ;;  %s524_s1 = inlined_call_operand.hbm [shape: f32[4,1,256], index: 1, kind: output, shape index: {}]  }
   0x1   :  { %7 = vsyncpa [#allocation4], 0 }
   0x2   :  { %9 = vsyncpa [#allocation4 + $0x1], 0  ;;  %s428_s6 = smov 0   ;;  %s430_s7 = smov 0  }
   0x3   :  { %s432_s8 = smov 0   ;;  %s434_s9 = smov 0  }
   0x4   :  { %s436_s10 = smov 0   ;;  %s438_s11 = smov 0  }
   0x5 LB: > { %s226_s12 = sadd.s32 4294967295, %s415_s11   ;;  %s227_s13 = sadd.s32 4294967294, %s415_s11   ;;  %s415_s11 = sphi %s438_s11, %s15_s11   ;;  %s411_s10 = sphi %s436_s10, %s531_s10   ;;  %s407_s9 = sphi %s434_s9, %s530_s9   ;;  %s403_s8 = sphi %s432_s8, %s529_s8   ;;  %s399_s7 = sphi %s430_s7, %s528_s7   ;;  %s395_s6 = sphi %s428_s6, %s527_s6  }
   0x6   : > { %s24_s14 = sadd.s32 1, %s411_s10  ;;  %s62_s15 = sadd.s32 1, %s403_s8 }
   0x7   : > { %p25_p0 = scmp.ge.s32.totalorder %s24_s14, 4  ;;  %p72_p1 = scmp.ne.s32.totalorder %s403_s8, %s399_s7 }
   0x8   : > { %p73_p2 = scmp.eq.s32.totalorder %s226_s12, 3  ;;  %p78_p3 = scmp.ne.s32.totalorder %s399_s7, %s395_s6 }
   0x9   : > { %s533_s14 = smov (%p25_p0, %s24_s14), 0  ;;  %p79_p5 = scmp.eq.s32.totalorder %s227_s13, 3 }
   0xa   : > { %p468_p4 = por %p73_p2, %p72_p1  ;;  %s57_s17 = ssub.s32 %s411_s10, %s533_s14 }
   0xb   : > { %p228_p6 = scmp.ge.s32.totalorder %s415_s11, 1  ;;  %p60_p7 = scmp.eq.s32.totalorder %s57_s17, 0 }
   0xc   : > { %p475_p8 = por %p79_p5, %p78_p3  ;;  %p86_p9 = scmp.lt.s32.totalorder %s415_s11, 5 }
   0xd   : > { %s481_s19 = scalar_select %p60_p7, %s403_s8, %s62_s15  }
   0xe   : > { %p87_p10 = pnand %p228_p6, %p86_p9  ;;  %p251_p11 = scmp.eq.s32.totalorder %s226_s12, 0 }
   0xf   : > { %s100_s22 = sshll.u32 %s523_s0, 4  ;;  %s417_s23 = smov [#allocation2]   ;;  %s101_s22 = int_to_ptr.hbm [resolvable:$true] %s100_s22 }
  0x10   : > { %p243_p12 = pneg %p87_p10  ;;  %s102_s24 = sshll.u32 %s417_s23, 4  ;;  %s103_s24 = int_to_ptr.vmem [resolvable:$true] %s102_s24 }
  0x11   : > { %115 = sbr.rel (%p87_p10) target bundleno = 39 (0x27), region = 24 }
  0x12   : > { %p244_p13 = pnand %p251_p11, %p243_p12 }
  0x14   : > { %246 = dma.hbm_to_vmem [thread:$0]  (!%p244_p13), %s101_s22, 32, %s103_s24, [#allocation3]  }
  0x16   : > { %386 = dma.done.wait (%p251_p11), [#allocation3], 32  }
  0x17   : > { %388 = vsyncadd (%p251_p11), [#allocation3], 4294967264  ;;  %s128_s25 = sand.u32 1, %s399_s7   ;;  %s234_s26 = sshll.u32 %s407_s9, 1  ;;  %v132_v0 = vlaneseq  ;;  %v131_v1 = vld [vmem:[#allocation2] sm:$0x3] }
  0x18   : > { %s232_s27 = sshll.u32 %s128_s25, 1  ;;  %s150_s30 = scalar_lea.hbm %s524_s1, %s234_s26 }
  0x19   : > { %s130_s2 = scalar_lea.vmem [#allocation5], %s232_s27  ;;  %s154_s4 = sshll.u32 %s150_s30, 4  ;;  %vm134_vm0 = vcmp.lt.s32.totalorder %v132_v0, 256  ;;  %s155_s4 = int_to_ptr.hbm [resolvable:$true] %s154_s4 }
  0x1a   : > { %s152_s3 = sshll.u32 %s130_s2, 4  ;;  %136 = vst.msk [vmem:[%s130_s2] sm:$0x3] %vm134_vm0, %v131_v1  ;;  %s138_s5 = scalar_lea.sflag [#allocation4], %s128_s25  ;;  %s153_s3 = int_to_ptr.vmem [resolvable:$true] %s152_s3 }
  0x1b   : > { %s347_s12 = sshra.s32 %s155_s4, 4  ;;  %s353_s17 = scalar_lea.hbm %s524_s1, 8  ;;  %s348_s12 = int_to_ptr.hbm [resolvable:$true] %s347_s12 }
  0x1c   : > { %s349_s13 = scalar_lea.hbm %s348_s12, 2  ;;  %p354_p3 = scmp.lt.s32.totalorder %s348_s12, %s524_s1 }
  0x1d   : > { %p350_p0 = scmp.ne.s32.totalorder %s348_s12, %s349_s13  ;;  %p355_p5 = scmp.lt.s32.totalorder %s353_s17, %s349_s13 }
  0x1f   : > { %p351_p1 = pnand %p350_p0, %p468_p4  ;;  %p356_p6 = por %p355_p5, %p354_p3 }
  0x21   : > { %p352_p2 = pneg %p351_p1 }
  0x23   : > { %p357_p7 = pnand %p356_p6, %p352_p2 }
  0x25   : > { %360 = shalt.err (!%p357_p7)
}
  0x26   : > { %241 = dma.vmem_to_hbm [thread:$0]  (%p468_p4), %s153_s3, 32, %s155_s4, %s138_s5  }
  0x27 PF: > { %p253_p9 = scmp.ge.s32.totalorder %s415_s11, 2  ;;  %s166_s22 = sand.u32 1, %s395_s6  }
  0x28   : > { %s167_s23 = scalar_lea.sflag [#allocation4], %s166_s22 }
  0x29   : > { %p248_p10 = pnand %p253_p9, %p475_p8 }
  0x2b   : > { %p249_p11 = pneg %p248_p10 }
  0x2d   : > { %390 = dma.done.wait (%p249_p11), %s167_s23, 32  }
  0x2e   : > { %392 = vsyncadd (%p249_p11), %s167_s23, 4294967264  ;;  %s15_s11 = sadd.s32 1, %s415_s11   ;;  %s527_s6 = smov %s399_s7 }
  0x2f   : > { %p12_p12 = scmp.ge.s32.totalorder %s15_s11, 6   ;;  %s528_s7 = smov %s403_s8 }
  0x30   : > { %s529_s8 = smov %s481_s19  ;;  %s530_s9 = smov %s411_s10 }
  0x31   : > { %s531_s10 = smov %s533_s14  ;;  %14 = sbr.rel (!%p12_p12) target bundleno = 5 (0x5), region = 62 }
  0x36   :  { %173 = vsyncpa [#allocation3], 1 }
  0x37   :  { %175 = vsyncpa [#allocation3 + $0x1], 1 }
  0x38   :  { %176 = vsyncpa [#allocation4], 1 }
  0x39   :  { %178 = vsyncpa [#allocation4 + $0x1], 1 }

</bundles_post_ra>
